<compile_context>
chip_gen: v6e
topology: v6e:2x2x1
jax: 0.10.0
libtpu: 0.0.40
codegen_flags: <defaults>
</compile_context>

<pallas_src>
import jax
import jax.numpy as jnp
from jax.experimental import pallas as pl
from jax.experimental.pallas import tpu as pltpu

N = 2          # batch
C_IN = 4       # in_channels
C_OUT = 8      # out_channels
H = 16         # time axis (convolved by the (7,1) kernels); needs H % 4 == 0
W = 8          # lead axis (kernel size 1 -> untouched)
KH = 7         # conv kernel height
PAD = 3        # conv1 'same' padding and conv2 H padding
H_OUT = H // 2
HP = H + 2 * PAD          # padded height per batch element
Q = H_OUT // 2            # output-row pairs per batch element
R = KH + 2                # union of taps feeding one (even, odd) output pair
EPS = 1e-5

_VMEM = pl.BlockSpec(memory_space=pltpu.MemorySpace.VMEM)


# ---------------- fused Pallas kernel ----------------

def block_kernel(xr_ref, w1_ref, b1_ref, w2_ref, b2_ref, wsk_ref, o_ref,
                 ypad_ref):
    # xr_ref : (N*HP, W*C_IN)        padded input, lanes = (w, ci)
    # w1_ref : (KH*W*C_IN, W*C_OUT)  conv1 block-diag-in-w weight, bn1 folded
    # b1_ref : (1, W*C_OUT)
    # w2_ref : (R*W*C_OUT, 2*W*C_OUT) conv2 pair-packed weight, bn2 folded
    # b2_ref : (1, 2*W*C_OUT)
    # wsk_ref: (4*W*C_IN, 2*2*W*C_OUT) skip weight producing both pool candidates
    # o_ref  : (N*Q, 2*W*C_OUT) = (8, 128) lane-dense output slab
    # ypad_ref: (N*HP, W*C_OUT) padded-y1 scratch
    # NOTE: MXU runs at default precision; parity with the HIGHEST-precision
    #       reference is checked with a loose tolerance.

    # ---- conv1 (7,1) 'same' + folded bn1 + relu : ONE matmul (K = KH*W*C_IN).
    lhs1 = jnp.concatenate(
        [jnp.concatenate(
            [xr_ref[n * HP + kh: n * HP + kh + H, :] for kh in range(KH)],
            axis=1)
         for n in range(N)], axis=0)                       # (N*H, KH*W*C_IN)
    y1 = jnp.dot(lhs1, w1_ref[...],
                 preferred_element_type=jnp.float32) + b1_ref[...]
    y1 = jnp.maximum(y1, 0.0)                              # (N*H, W*C_OUT)

    # ---- padded-y1 scratch: zero ONLY the halo rows, then write the interior.
    zhalo = jnp.zeros((PAD, W * C_OUT), jnp.float32)
    for n in range(N):
        ypad_ref[n * HP: n * HP + PAD, :] = zhalo
        ypad_ref[n * HP + PAD + H: (n + 1) * HP, :] = zhalo
        ypad_ref[n * HP + PAD: n * HP + PAD + H, :] = y1[n * H:(n + 1) * H, :]

    # ---- conv2 (7,1), stride (2,1), pad (PAD,0) + folded bn2 : ONE matmul.
    # Rows = (n, h2-pair); lanes = (h2-parity, w, co) -> natively (8, 128).
    # Stride-4 row selection is a strided VMEM load (pl.ds with stride).
    lhs2 = jnp.concatenate(
        [jnp.concatenate(
            [ypad_ref[pl.ds(n * HP + r, Q, stride=4), :] for r in range(R)],
            axis=1)
         for n in range(N)], axis=0)                       # (N*Q, R*W*C_OUT)
    y2 = jnp.dot(lhs2, w2_ref[...],
                 preferred_element_type=jnp.float32) + b2_ref[...]

    # ---- skip 1x1 conv + MaxPool2d((2,1)) : ONE matmul producing both pool
    # candidates side by side on the lanes, then a lane-split max (split at the
    # 128-lane vreg boundary).
    lhss = jnp.concatenate(
        [jnp.concatenate(
            [xr_ref[pl.ds(n * HP + PAD + s, Q, stride=4), :] for s in range(4)],
            axis=1)
         for n in range(N)], axis=0)                       # (N*Q, 4*W*C_IN)
    sk = jnp.dot(lhss, wsk_ref[...],
                 preferred_element_type=jnp.float32)       # (N*Q, 2*2*W*C_OUT)
    half = 2 * W * C_OUT
    idn = jnp.maximum(sk[:, :half], sk[:, half:])          # (N*Q, 2*W*C_OUT)

    # ---- residual add + relu; single fully lane-dense (8, 128) store.
    o_ref[...] = jnp.maximum(y2 + idn, 0.0)


def _fused_block(xr, w1p, b1, w2p, b2, wskp):
    return pl.pallas_call(
        block_kernel,
        out_shape=jax.ShapeDtypeStruct((N * Q, 2 * W * C_OUT), jnp.float32),
        in_specs=[_VMEM] * 6,
        out_specs=_VMEM,
        scratch_shapes=[pltpu.VMEM((N * HP, W * C_OUT), jnp.float32)],
    )(xr, w1p, b1, w2p, b2, wskp)


# ---------------- wrapper (layout glue on the activation only) ----------------

def block_forward(x, prepped):
    """x: (N, C_in, H, W) float32 NCHW. Returns (N, C_out, H//2, W) NCHW."""
    w1p, b1, w2p, b2, wskp = prepped
    n, ci, h, w = x.shape
    assert h % 4 == 0, "pair-packed output layout assumes H % 4 == 0"
    # NCHW -> (N*Hpad, W*Ci): (w, ci) on lanes, PAD zero halo rows per batch.
    xt = jnp.transpose(x, (0, 2, 3, 1))
    xt = jnp.pad(xt, ((0, 0), (PAD, PAD), (0, 0), (0, 0)))
    xr = xt.reshape(n * (h + 2 * PAD), w * ci)

    slab = _fused_block(xr, w1p, b1, w2p, b2, wskp)        # (N*Q, 2*W*C_OUT)

    # slab[n*Q+q, p*(W*Co) + w*Co + co]  ->  out[n, co, 2q+p, w]
    out = slab.reshape(n, h // 4, 2, w, C_OUT)
    out = jnp.transpose(out, (0, 4, 1, 2, 3)).reshape(n, C_OUT, h // 2, w)
    return out


# ---------------- one-time parameter prep (hoisted off the hot path) ----------

def prepare_params(params):
    """Fold eval-mode BatchNorm into the conv weights and pre-pack every weight
    into the kernel's block-diagonal-in-w matmul layout (one-time cost)."""
    (wc1, g1, be1, m1, v1, wc2, g2, be2, m2, v2, wsk) = params
    s1 = g1 / jnp.sqrt(v1 + EPS)
    t1 = be1 - m1 * s1
    s2 = g2 / jnp.sqrt(v2 + EPS)
    t2 = be2 - m2 * s2
    eye_w = jnp.eye(W, dtype=jnp.float32)

    # conv1: (Co, Ci, KH, 1) -> w1[kh, ci, co], bn1 scale folded along co.
    w1 = jnp.transpose(wc1[:, :, :, 0], (2, 1, 0)) * s1            # (KH,Ci,Co)
    # W1[(kh, w, ci), (w', co)] = w1[kh, ci, co] * (w == w')
    w1p = jnp.einsum('kic,wx->kwixc', w1, eye_w).reshape(KH * W * C_IN,
                                                         W * C_OUT)
    b1row = jnp.tile(t1, W).reshape(1, W * C_OUT)

    # conv2: pair-packed.  w2hat[r, p, c1, co] = w2[r - 2p] for 0 <= r-2p < KH.
    w2 = jnp.transpose(wc2[:, :, :, 0], (2, 1, 0)) * s2            # (KH,Co,Co)
    w2hat = jnp.zeros((R, 2, C_OUT, C_OUT), jnp.float32)
    for p in range(2):
        w2hat = w2hat.at[2 * p: 2 * p + KH, p].set(w2)
    # W2[(r, w, c1), (p, w', co)] = w2hat[r, p, c1, co] * (w == w')
    w2p = jnp.einsum('rpcd,wx->rwcpxd', w2hat, eye_w).reshape(R * W * C_OUT,
                                                              2 * W * C_OUT)
    b2row = jnp.tile(t2, 2 * W).reshape(1, 2 * W * C_OUT)

    # skip 1x1: produce both MaxPool candidates (j = 0/1) on the lanes.
    wskm = wsk[:, :, 0, 0].T                                        # (Ci, Co)
    sel = jnp.zeros((4, 2, 2), jnp.float32)                         # sel[s,j,p]
    for p in range(2):
        for j in range(2):
            sel = sel.at[2 * p + j, j, p].set(1.0)
    # WS[(s, w, ci), (j, p, w', co)] = wskm[ci, co] * (w == w') * (s == 2p + j)
    wskp = jnp.einsum('sjp,wx,cd->swcjpxd', sel, eye_w, wskm).reshape(
        4 * W * C_IN, 2 * 2 * W * C_OUT)

    return (w1p, b1row, w2p, b2row, wskp)


def init_params(key):
    """PyTorch-style deterministic init for Block(C_IN, C_OUT, padding=PAD)."""
    k = jax.random.split(key, 11)
    bound1 = 1.0 / jnp.sqrt(C_IN * KH)
    wc1 = jax.random.uniform(k[0], (C_OUT, C_IN, KH, 1), jnp.float32,
                             -bound1, bound1)
    bound2 = 1.0 / jnp.sqrt(C_OUT * KH)
    wc2 = jax.random.uniform(k[1], (C_OUT, C_OUT, KH, 1), jnp.float32,
                             -bound2, bound2)
    bs = 1.0 / jnp.sqrt(C_IN)
    wsk = jax.random.uniform(k[2], (C_OUT, C_IN, 1, 1), jnp.float32, -bs, bs)
    # BatchNorm eval params / running stats (deterministic, non-trivial).
    g1 = jax.random.uniform(k[3], (C_OUT,), jnp.float32, 0.5, 1.5)
    be1 = jax.random.uniform(k[4], (C_OUT,), jnp.float32, -0.1, 0.1)
    m1 = jax.random.uniform(k[5], (C_OUT,), jnp.float32, -0.1, 0.1)
    v1 = jax.random.uniform(k[6], (C_OUT,), jnp.float32, 0.5, 1.5)
    g2 = jax.random.uniform(k[7], (C_OUT,), jnp.float32, 0.5, 1.5)
    be2 = jax.random.uniform(k[8], (C_OUT,), jnp.float32, -0.1, 0.1)
    m2 = jax.random.uniform(k[9], (C_OUT,), jnp.float32, -0.1, 0.1)
    v2 = jax.random.uniform(k[10], (C_OUT,), jnp.float32, 0.5, 1.5)
    return (wc1, g1, be1, m1, v1, wc2, g2, be2, m2, v2, wsk)


# ---------------- pure-JAX reference (checks the packed layout end-to-end) ----

def reference_forward(x, params):
    (wc1, g1, be1, m1, v1, wc2, g2, be2, m2, v2, wsk) = params
    dn = ("NCHW", "OIHW", "NCHW")
    hp = jax.lax.Precision.HIGHEST

    def bn(y, g, b, m, v):
        inv = g / jnp.sqrt(v + EPS)
        return y * inv[None, :, None, None] + (b - m * inv)[None, :, None, None]

    idn = jax.lax.conv_general_dilated(x, wsk, (1, 1), "SAME",
                                       dimension_numbers=dn, precision=hp)
    idn = jax.lax.reduce_window(idn, -jnp.inf, jax.lax.max,
                                (1, 1, 2, 1), (1, 1, 2, 1), "VALID")
    y = jax.lax.conv_general_dilated(x, wc1, (1, 1), "SAME",
                                     dimension_numbers=dn, precision=hp)
    y = jnp.maximum(bn(y, g1, be1, m1, v1), 0.0)
    y = jax.lax.conv_general_dilated(y, wc2, (2, 1), [(PAD, PAD), (0, 0)],
                                     dimension_numbers=dn, precision=hp)
    y = bn(y, g2, be2, m2, v2)
    return jnp.maximum(y + idn, 0.0)


if __name__ == "__main__":
    key = jax.random.PRNGKey(0)
    k_x, k_p = jax.random.split(key)
    x = jax.random.normal(k_x, (N, C_IN, H, W), jnp.float32)
    params = init_params(k_p)
    prepped = prepare_params(params)

    out = jax.jit(block_forward)(x, prepped)
    out = jax.block_until_ready(out)

    assert out.shape == (N, C_OUT, H_OUT, W), out.shape
    assert out.dtype == jnp.float32
    assert bool(jnp.all(jnp.isfinite(out)))
    assert bool(jnp.all(out >= 0.0))

    ref = jax.jit(reference_forward)(x, params)
    ref = jax.block_until_ready(ref)
    assert bool(jnp.allclose(out, ref, atol=2e-2, rtol=2e-2)), (
        float(jnp.max(jnp.abs(out - ref))))

    print("KERNEL_OK")
</pallas_src>

<mosaic_0001>
module attributes {stable_mosaic.version = 11 : i64} {
  func.func @block_kernel(%arg0: memref<44x32xf32, #tpu.memory_space<vmem>>, %arg1: memref<224x64xf32, #tpu.memory_space<vmem>>, %arg2: memref<1x64xf32, #tpu.memory_space<vmem>>, %arg3: memref<576x128xf32, #tpu.memory_space<vmem>>, %arg4: memref<1x128xf32, #tpu.memory_space<vmem>>, %arg5: memref<128x256xf32, #tpu.memory_space<vmem>>, %arg6: memref<8x128xf32, #tpu.memory_space<vmem>>, %arg7: memref<44x64xf32, #tpu.memory_space<vmem>>) attributes {dimension_semantics = [], scalar_prefetch = 0 : i64, scratch_operands = 1 : i64, tpu.core_type = #tpu.core_type<tc>} {
    %c0 = arith.constant 0 : index
    %c0_0 = arith.constant 0 : index
    %0 = vector.load %arg0[%c0, %c0_0] : memref<44x32xf32, #tpu.memory_space<vmem>>, vector<16x32xf32>
    %c1 = arith.constant 1 : index
    %c0_1 = arith.constant 0 : index
    %1 = vector.load %arg0[%c1, %c0_1] : memref<44x32xf32, #tpu.memory_space<vmem>>, vector<16x32xf32>
    %c2 = arith.constant 2 : index
    %c0_2 = arith.constant 0 : index
    %2 = vector.load %arg0[%c2, %c0_2] : memref<44x32xf32, #tpu.memory_space<vmem>>, vector<16x32xf32>
    %c3 = arith.constant 3 : index
    %c0_3 = arith.constant 0 : index
    %3 = vector.load %arg0[%c3, %c0_3] : memref<44x32xf32, #tpu.memory_space<vmem>>, vector<16x32xf32>
    %c4 = arith.constant 4 : index
    %c0_4 = arith.constant 0 : index
    %4 = vector.load %arg0[%c4, %c0_4] : memref<44x32xf32, #tpu.memory_space<vmem>>, vector<16x32xf32>
    %c5 = arith.constant 5 : index
    %c0_5 = arith.constant 0 : index
    %5 = vector.load %arg0[%c5, %c0_5] : memref<44x32xf32, #tpu.memory_space<vmem>>, vector<16x32xf32>
    %c6 = arith.constant 6 : index
    %c0_6 = arith.constant 0 : index
    %6 = vector.load %arg0[%c6, %c0_6] : memref<44x32xf32, #tpu.memory_space<vmem>>, vector<16x32xf32>
    %7 = tpu.concatenate %0, %1, %2, %3, %4, %5, %6 in 1 : vector<16x32xf32>, vector<16x32xf32>, vector<16x32xf32>, vector<16x32xf32>, vector<16x32xf32>, vector<16x32xf32>, vector<16x32xf32> -> vector<16x224xf32>
    %c22 = arith.constant 22 : index
    %c0_7 = arith.constant 0 : index
    %8 = vector.load %arg0[%c22, %c0_7] : memref<44x32xf32, #tpu.memory_space<vmem>>, vector<16x32xf32>
    %c23 = arith.constant 23 : index
    %c0_8 = arith.constant 0 : index
    %9 = vector.load %arg0[%c23, %c0_8] : memref<44x32xf32, #tpu.memory_space<vmem>>, vector<16x32xf32>
    %c24 = arith.constant 24 : index
    %c0_9 = arith.constant 0 : index
    %10 = vector.load %arg0[%c24, %c0_9] : memref<44x32xf32, #tpu.memory_space<vmem>>, vector<16x32xf32>
    %c25 = arith.constant 25 : index
    %c0_10 = arith.constant 0 : index
    %11 = vector.load %arg0[%c25, %c0_10] : memref<44x32xf32, #tpu.memory_space<vmem>>, vector<16x32xf32>
    %c26 = arith.constant 26 : index
    %c0_11 = arith.constant 0 : index
    %12 = vector.load %arg0[%c26, %c0_11] : memref<44x32xf32, #tpu.memory_space<vmem>>, vector<16x32xf32>
    %c27 = arith.constant 27 : index
    %c0_12 = arith.constant 0 : index
    %13 = vector.load %arg0[%c27, %c0_12] : memref<44x32xf32, #tpu.memory_space<vmem>>, vector<16x32xf32>
    %c28 = arith.constant 28 : index
    %c0_13 = arith.constant 0 : index
    %14 = vector.load %arg0[%c28, %c0_13] : memref<44x32xf32, #tpu.memory_space<vmem>>, vector<16x32xf32>
    %15 = tpu.concatenate %8, %9, %10, %11, %12, %13, %14 in 1 : vector<16x32xf32>, vector<16x32xf32>, vector<16x32xf32>, vector<16x32xf32>, vector<16x32xf32>, vector<16x32xf32>, vector<16x32xf32> -> vector<16x224xf32>
    %16 = tpu.concatenate %7, %15 in 0 : vector<16x224xf32>, vector<16x224xf32> -> vector<32x224xf32>
    %c0_14 = arith.constant 0 : index
    %c0_15 = arith.constant 0 : index
    %17 = vector.load %arg1[%c0_14, %c0_15] : memref<224x64xf32, #tpu.memory_space<vmem>>, vector<224x64xf32>
    %cst = arith.constant dense<0.000000e+00> : vector<32x64xf32>
    %18 = tpu.matmul %16, %17, %cst {dimension_numbers = #tpu.dot_dimension_numbers<[1], [0], [0], [1], [0, 0, 1, 1], [], []>} : vector<32x224xf32>, vector<224x64xf32>, vector<32x64xf32> -> vector<32x64xf32>
    %c0_16 = arith.constant 0 : index
    %c0_17 = arith.constant 0 : index
    %19 = vector.load %arg2[%c0_16, %c0_17] : memref<1x64xf32, #tpu.memory_space<vmem>>, vector<1x64xf32>
    %20 = vector.broadcast %19 : vector<1x64xf32> to vector<32x64xf32>
    %21 = arith.addf %18, %20 : vector<32x64xf32>
    %cst_18 = arith.constant 0.000000e+00 : f32
    %22 = vector.broadcast %cst_18 : f32 to vector<32x64xf32>
    %23 = arith.maximumf %21, %22 : vector<32x64xf32>
    %cst_19 = arith.constant 0.000000e+00 : f32
    %24 = vector.broadcast %cst_19 : f32 to vector<3x64xf32>
    %c0_20 = arith.constant 0 : index
    %c0_21 = arith.constant 0 : index
    %25 = vector.load %arg7[%c0_20, %c0_21] : memref<44x64xf32, #tpu.memory_space<vmem>>, vector<3x64xf32>
    tpu.vector_store %arg7[%c0_20, %c0_21], %24 {strides = array<i32>} : memref<44x64xf32, #tpu.memory_space<vmem>>, vector<3x64xf32>,
    %c19 = arith.constant 19 : index
    %c0_22 = arith.constant 0 : index
    %26 = vector.load %arg7[%c19, %c0_22] : memref<44x64xf32, #tpu.memory_space<vmem>>, vector<3x64xf32>
    tpu.vector_store %arg7[%c19, %c0_22], %24 {strides = array<i32>} : memref<44x64xf32, #tpu.memory_space<vmem>>, vector<3x64xf32>,
    %27 = vector.extract_strided_slice %23 {offsets = [0, 0], sizes = [16, 64], strides = [1, 1]} : vector<32x64xf32> to vector<16x64xf32>
    %c3_23 = arith.constant 3 : index
    %c0_24 = arith.constant 0 : index
    %28 = vector.load %arg7[%c3_23, %c0_24] : memref<44x64xf32, #tpu.memory_space<vmem>>, vector<16x64xf32>
    tpu.vector_store %arg7[%c3_23, %c0_24], %27 {strides = array<i32>} : memref<44x64xf32, #tpu.memory_space<vmem>>, vector<16x64xf32>,
    %c22_25 = arith.constant 22 : index
    %c0_26 = arith.constant 0 : index
    %29 = vector.load %arg7[%c22_25, %c0_26] : memref<44x64xf32, #tpu.memory_space<vmem>>, vector<3x64xf32>
    tpu.vector_store %arg7[%c22_25, %c0_26], %24 {strides = array<i32>} : memref<44x64xf32, #tpu.memory_space<vmem>>, vector<3x64xf32>,
    %c41 = arith.constant 41 : index
    %c0_27 = arith.constant 0 : index
    %30 = vector.load %arg7[%c41, %c0_27] : memref<44x64xf32, #tpu.memory_space<vmem>>, vector<3x64xf32>
    tpu.vector_store %arg7[%c41, %c0_27], %24 {strides = array<i32>} : memref<44x64xf32, #tpu.memory_space<vmem>>, vector<3x64xf32>,
    %31 = vector.extract_strided_slice %23 {offsets = [16, 0], sizes = [16, 64], strides = [1, 1]} : vector<32x64xf32> to vector<16x64xf32>
    %c25_28 = arith.constant 25 : index
    %c0_29 = arith.constant 0 : index
    %32 = vector.load %arg7[%c25_28, %c0_29] : memref<44x64xf32, #tpu.memory_space<vmem>>, vector<16x64xf32>
    tpu.vector_store %arg7[%c25_28, %c0_29], %31 {strides = array<i32>} : memref<44x64xf32, #tpu.memory_space<vmem>>, vector<16x64xf32>,
    %c0_30 = arith.constant 0 : index
    %c0_31 = arith.constant 0 : index
    %33 = tpu.strided_load %arg7[%c0_30, %c0_31] {strides = array<i32: 4, 1>} : memref<44x64xf32, #tpu.memory_space<vmem>>, vector<4x64xf32>
    %c1_32 = arith.constant 1 : index
    %c0_33 = arith.constant 0 : index
    %34 = tpu.strided_load %arg7[%c1_32, %c0_33] {strides = array<i32: 4, 1>} : memref<44x64xf32, #tpu.memory_space<vmem>>, vector<4x64xf32>
    %c2_34 = arith.constant 2 : index
    %c0_35 = arith.constant 0 : index
    %35 = tpu.strided_load %arg7[%c2_34, %c0_35] {strides = array<i32: 4, 1>} : memref<44x64xf32, #tpu.memory_space<vmem>>, vector<4x64xf32>
    %c3_36 = arith.constant 3 : index
    %c0_37 = arith.constant 0 : index
    %36 = tpu.strided_load %arg7[%c3_36, %c0_37] {strides = array<i32: 4, 1>} : memref<44x64xf32, #tpu.memory_space<vmem>>, vector<4x64xf32>
    %c4_38 = arith.constant 4 : index
    %c0_39 = arith.constant 0 : index
    %37 = tpu.strided_load %arg7[%c4_38, %c0_39] {strides = array<i32: 4, 1>} : memref<44x64xf32, #tpu.memory_space<vmem>>, vector<4x64xf32>
    %c5_40 = arith.constant 5 : index
    %c0_41 = arith.constant 0 : index
    %38 = tpu.strided_load %arg7[%c5_40, %c0_41] {strides = array<i32: 4, 1>} : memref<44x64xf32, #tpu.memory_space<vmem>>, vector<4x64xf32>
    %c6_42 = arith.constant 6 : index
    %c0_43 = arith.constant 0 : index
    %39 = tpu.strided_load %arg7[%c6_42, %c0_43] {strides = array<i32: 4, 1>} : memref<44x64xf32, #tpu.memory_space<vmem>>, vector<4x64xf32>
    %c7 = arith.constant 7 : index
    %c0_44 = arith.constant 0 : index
    %40 = tpu.strided_load %arg7[%c7, %c0_44] {strides = array<i32: 4, 1>} : memref<44x64xf32, #tpu.memory_space<vmem>>, vector<4x64xf32>
    %c8 = arith.constant 8 : index
    %c0_45 = arith.constant 0 : index
    %41 = tpu.strided_load %arg7[%c8, %c0_45] {strides = array<i32: 4, 1>} : memref<44x64xf32, #tpu.memory_space<vmem>>, vector<4x64xf32>
    %42 = tpu.concatenate %33, %34, %35, %36, %37, %38, %39, %40, %41 in 1 : vector<4x64xf32>, vector<4x64xf32>, vector<4x64xf32>, vector<4x64xf32>, vector<4x64xf32>, vector<4x64xf32>, vector<4x64xf32>, vector<4x64xf32>, vector<4x64xf32> -> vector<4x576xf32>
    %c22_46 = arith.constant 22 : index
    %c0_47 = arith.constant 0 : index
    %43 = tpu.strided_load %arg7[%c22_46, %c0_47] {strides = array<i32: 4, 1>} : memref<44x64xf32, #tpu.memory_space<vmem>>, vector<4x64xf32>
    %c23_48 = arith.constant 23 : index
    %c0_49 = arith.constant 0 : index
    %44 = tpu.strided_load %arg7[%c23_48, %c0_49] {strides = array<i32: 4, 1>} : memref<44x64xf32, #tpu.memory_space<vmem>>, vector<4x64xf32>
    %c24_50 = arith.constant 24 : index
    %c0_51 = arith.constant 0 : index
    %45 = tpu.strided_load %arg7[%c24_50, %c0_51] {strides = array<i32: 4, 1>} : memref<44x64xf32, #tpu.memory_space<vmem>>, vector<4x64xf32>
    %c25_52 = arith.constant 25 : index
    %c0_53 = arith.constant 0 : index
    %46 = tpu.strided_load %arg7[%c25_52, %c0_53] {strides = array<i32: 4, 1>} : memref<44x64xf32, #tpu.memory_space<vmem>>, vector<4x64xf32>
    %c26_54 = arith.constant 26 : index
    %c0_55 = arith.constant 0 : index
    %47 = tpu.strided_load %arg7[%c26_54, %c0_55] {strides = array<i32: 4, 1>} : memref<44x64xf32, #tpu.memory_space<vmem>>, vector<4x64xf32>
    %c27_56 = arith.constant 27 : index
    %c0_57 = arith.constant 0 : index
    %48 = tpu.strided_load %arg7[%c27_56, %c0_57] {strides = array<i32: 4, 1>} : memref<44x64xf32, #tpu.memory_space<vmem>>, vector<4x64xf32>
    %c28_58 = arith.constant 28 : index
    %c0_59 = arith.constant 0 : index
    %49 = tpu.strided_load %arg7[%c28_58, %c0_59] {strides = array<i32: 4, 1>} : memref<44x64xf32, #tpu.memory_space<vmem>>, vector<4x64xf32>
    %c29 = arith.constant 29 : index
    %c0_60 = arith.constant 0 : index
    %50 = tpu.strided_load %arg7[%c29, %c0_60] {strides = array<i32: 4, 1>} : memref<44x64xf32, #tpu.memory_space<vmem>>, vector<4x64xf32>
    %c30 = arith.constant 30 : index
    %c0_61 = arith.constant 0 : index
    %51 = tpu.strided_load %arg7[%c30, %c0_61] {strides = array<i32: 4, 1>} : memref<44x64xf32, #tpu.memory_space<vmem>>, vector<4x64xf32>
    %52 = tpu.concatenate %43, %44, %45, %46, %47, %48, %49, %50, %51 in 1 : vector<4x64xf32>, vector<4x64xf32>, vector<4x64xf32>, vector<4x64xf32>, vector<4x64xf32>, vector<4x64xf32>, vector<4x64xf32>, vector<4x64xf32>, vector<4x64xf32> -> vector<4x576xf32>
    %53 = tpu.concatenate %42, %52 in 0 : vector<4x576xf32>, vector<4x576xf32> -> vector<8x576xf32>
    %c0_62 = arith.constant 0 : index
    %c0_63 = arith.constant 0 : index
    %54 = vector.load %arg3[%c0_62, %c0_63] : memref<576x128xf32, #tpu.memory_space<vmem>>, vector<576x128xf32>
    %cst_64 = arith.constant dense<0.000000e+00> : vector<8x128xf32>
    %55 = tpu.matmul %53, %54, %cst_64 {dimension_numbers = #tpu.dot_dimension_numbers<[1], [0], [0], [1], [0, 0, 1, 1], [], []>} : vector<8x576xf32>, vector<576x128xf32>, vector<8x128xf32> -> vector<8x128xf32>
    %c0_65 = arith.constant 0 : index
    %c0_66 = arith.constant 0 : index
    %56 = vector.load %arg4[%c0_65, %c0_66] : memref<1x128xf32, #tpu.memory_space<vmem>>, vector<1x128xf32>
    %57 = vector.broadcast %56 : vector<1x128xf32> to vector<8x128xf32>
    %58 = arith.addf %55, %57 : vector<8x128xf32>
    %c3_67 = arith.constant 3 : index
    %c0_68 = arith.constant 0 : index
    %59 = tpu.strided_load %arg0[%c3_67, %c0_68] {strides = array<i32: 4, 1>} : memref<44x32xf32, #tpu.memory_space<vmem>>, vector<4x32xf32>
    %c4_69 = arith.constant 4 : index
    %c0_70 = arith.constant 0 : index
    %60 = tpu.strided_load %arg0[%c4_69, %c0_70] {strides = array<i32: 4, 1>} : memref<44x32xf32, #tpu.memory_space<vmem>>, vector<4x32xf32>
    %c5_71 = arith.constant 5 : index
    %c0_72 = arith.constant 0 : index
    %61 = tpu.strided_load %arg0[%c5_71, %c0_72] {strides = array<i32: 4, 1>} : memref<44x32xf32, #tpu.memory_space<vmem>>, vector<4x32xf32>
    %c6_73 = arith.constant 6 : index
    %c0_74 = arith.constant 0 : index
    %62 = tpu.strided_load %arg0[%c6_73, %c0_74] {strides = array<i32: 4, 1>} : memref<44x32xf32, #tpu.memory_space<vmem>>, vector<4x32xf32>
    %63 = tpu.concatenate %59, %60, %61, %62 in 1 : vector<4x32xf32>, vector<4x32xf32>, vector<4x32xf32>, vector<4x32xf32> -> vector<4x128xf32>
    %c25_75 = arith.constant 25 : index
    %c0_76 = arith.constant 0 : index
    %64 = tpu.strided_load %arg0[%c25_75, %c0_76] {strides = array<i32: 4, 1>} : memref<44x32xf32, #tpu.memory_space<vmem>>, vector<4x32xf32>
    %c26_77 = arith.constant 26 : index
    %c0_78 = arith.constant 0 : index
    %65 = tpu.strided_load %arg0[%c26_77, %c0_78] {strides = array<i32: 4, 1>} : memref<44x32xf32, #tpu.memory_space<vmem>>, vector<4x32xf32>
    %c27_79 = arith.constant 27 : index
    %c0_80 = arith.constant 0 : index
    %66 = tpu.strided_load %arg0[%c27_79, %c0_80] {strides = array<i32: 4, 1>} : memref<44x32xf32, #tpu.memory_space<vmem>>, vector<4x32xf32>
    %c28_81 = arith.constant 28 : index
    %c0_82 = arith.constant 0 : index
    %67 = tpu.strided_load %arg0[%c28_81, %c0_82] {strides = array<i32: 4, 1>} : memref<44x32xf32, #tpu.memory_space<vmem>>, vector<4x32xf32>
    %68 = tpu.concatenate %64, %65, %66, %67 in 1 : vector<4x32xf32>, vector<4x32xf32>, vector<4x32xf32>, vector<4x32xf32> -> vector<4x128xf32>
    %69 = tpu.concatenate %63, %68 in 0 : vector<4x128xf32>, vector<4x128xf32> -> vector<8x128xf32>
    %c0_83 = arith.constant 0 : index
    %c0_84 = arith.constant 0 : index
    %70 = vector.load %arg5[%c0_83, %c0_84] : memref<128x256xf32, #tpu.memory_space<vmem>>, vector<128x256xf32>
    %cst_85 = arith.constant dense<0.000000e+00> : vector<8x256xf32>
    %71 = tpu.matmul %69, %70, %cst_85 {dimension_numbers = #tpu.dot_dimension_numbers<[1], [0], [0], [1], [0, 0, 1, 1], [], []>} : vector<8x128xf32>, vector<128x256xf32>, vector<8x256xf32> -> vector<8x256xf32>
    %72 = vector.extract_strided_slice %71 {offsets = [0, 0], sizes = [8, 128], strides = [1, 1]} : vector<8x256xf32> to vector<8x128xf32>
    %73 = vector.extract_strided_slice %71 {offsets = [0, 128], sizes = [8, 128], strides = [1, 1]} : vector<8x256xf32> to vector<8x128xf32>
    %74 = arith.maximumf %72, %73 : vector<8x128xf32>
    %75 = arith.addf %58, %74 : vector<8x128xf32>
    %cst_86 = arith.constant 0.000000e+00 : f32
    %76 = vector.broadcast %cst_86 : f32 to vector<8x128xf32>
    %77 = arith.maximumf %75, %76 : vector<8x128xf32>
    %c0_87 = arith.constant 0 : index
    %c0_88 = arith.constant 0 : index
    %78 = vector.load %arg6[%c0_87, %c0_88] : memref<8x128xf32, #tpu.memory_space<vmem>>, vector<8x128xf32>
    tpu.vector_store %arg6[%c0_87, %c0_88], %77 {strides = array<i32>} : memref<8x128xf32, #tpu.memory_space<vmem>>, vector<8x128xf32>,
    return
  }
}

</mosaic_0001>

<bundles_post_ra>
// kernel: block_forward.1
= control target key start
LH: loop header
LB: loop body
LE: loop exit
PB: predicated region body
PF: predicated region fallthrough
CT: control target
= control target key end

     0   :  { %11 = vsyncpa [#allocation4], 0  ;;  %s1061_s21 = smov [#allocation3]   ;;  %s1646_s0 = inlined_call_operand.vmem [shape: f32[44,32], index: 0, kind: input, shape index: {}]   ;;  %s1647_s1 = inlined_call_operand.vmem [shape: f32[224,64], index: 1, kind: input, shape index: {}]   ;;  %s1648_s2 = inlined_call_operand.vmem [shape: f32[1,64], index: 2, kind: input, shape index: {}]   ;;  %s1649_s3 = inlined_call_operand.vmem [shape: f32[576,128], index: 3, kind: input, shape index: {}]   ;;  %s1650_s4 = inlined_call_operand.vmem [shape: f32[1,128], index: 4, kind: input, shape index: {}]   ;;  %s1651_s5 = inlined_call_operand.hbm [shape: f32[128,256], index: 5, kind: input, shape index: {}]   ;;  %s1652_s6 = inlined_call_operand.vmem [shape: f32[8,128], index: 6, kind: output, shape index: {}]  }
   0x1   :  { %s27_s22 = sshll.u32 %s1061_s21, 4  ;;  %s28_s22 = int_to_ptr.vmem [resolvable:$true] %s27_s22 }
   0x2   :  { %s1047_s23 = scalar_lea.vmem %s28_s22, 4096  ;;  %p1052_p1 = scmp.lt.s32.totalorder %s28_s22, %s28_s22 }
   0x3   :  { %p1048_p0 = scmp.ne.s32.totalorder %s28_s22, %s1047_s23  ;;  %p1053_p2 = scmp.lt.s32.totalorder %s1047_s23, %s1047_s23 }
   0x5   :  { %p1054_p3 = por %p1053_p2, %p1052_p1 }
   0x7   :  { %p1055_p4 = pnand %p1054_p3, %p1048_p0 }
   0x9   :  { %1058 = shalt.err (!%p1055_p4)
}
   0xa   :  { %s1062_s24 = smov 256   ;;  %s1063_s25 = smov 16  }
   0xb   :  { %33 = dma.hbm_to_vmem [thread:$0]  %s1651_s5, 4096, %s28_s22, [#allocation4], %s1062_s24, %s1062_s24, %s1063_s25  }
   0xc   :  { %1059 = dma.done.wait [#allocation4], 4096  }
   0xd   :  { %1060 = vsyncadd [#allocation4], 4294963200  ;;  %v1064_v0 = vmov 0.0   ;;  %v41_v1 = vld [vmem:[%s1646_s0 + $0x2] sm:$0xff]  ;;  %v42_v2 = vld [vmem:[%s1646_s0 + $0xa] sm:$0xff]  ;;  %s1065_s11 = smov 64  }
   0xe   :  { %215 = vmatprep.subr.mxu0 %v1064_v0  ;;  %v39_v3 = vld [vmem:[%s1646_s0 + $0x1] sm:$0xff]  ;;  %v989_v4 = vpack.i.bf16 %v42_v2, %v41_v1  ;;  %v40_v5 = vld [vmem:[%s1646_s0 + $0x9] sm:$0xff]  ;;  %s1066_s12 = smov 32   ;;  %v183_v11 = vld [vmem:[%s1647_s1 + $0x78] sm:$0xff]  ;;  %s1067_s5 = smov 96   ;;  %vm91_vm0 = vcmask 261120  }
   0xf   :  { %v984_v6 = vpack.i.bf16 %v40_v5, %v39_v3  ;;  %v49_v7 = vld [vmem:[%s1646_s0 + $0x6] sm:$0xff]  ;;  %216 = vmatpush1.msra.mxu0 %v183_v11  ;;  %v182_v13 = vld [vmem:[%s1647_s1 + $0x70] sm:$0xff]  ;;  %v108_v20 = vld [vmem:[%s1646_s0 + $0x18] sm:$0xff]  ;;  %vm97_vm1 = vcmask 785408   ;;  %vm94_vm2 = vcmask 523264   ;;  %vm304_vm3 = vcmask 518144  }
  0x10   :  { %990 = vrot.lane.b32.xlu1 %v989_v4, %s1065_s11  ;;  %v47_v8 = vld [vmem:[%s1646_s0 + $0x5] sm:$0xff]  ;;  %v48_v12 = vld [vmem:[%s1646_s0 + $0xd] sm:$0xff]  ;;  %v106_v15 = vld [vmem:[%s1646_s0 + $0x17] sm:$0xff]  ;;  %217 = vmatprep.subr.mxu0 %v1064_v0  ;;  %305 = vst.msk [vmem:[#allocation2] sm:$0x7] %vm304_vm3, %v1064_v0  ;;  %vm1068_vm4 = vmmov 0  }
  0x11   :  { %985 = vrot.lane.b32.xlu0 %v984_v6, %s1066_s12  ;;  %v43_v9 = vld [vmem:[%s1646_s0 + $0x3] sm:$0xff]  ;;  %v44_v10 = vld [vmem:[%s1646_s0 + $0xb] sm:$0xff]  ;;  %218 = vmatpush1.msra.mxu0 %v182_v13  ;;  %v179_v22 = vld [vmem:[%s1647_s1 + $0x58] sm:$0xff]  ;;  %310 = vst.msk [vmem:[#allocation2 + $0x29] sm:$0x7] %vm304_vm3, %v1064_v0  ;;  %vm403_vm5 = vcmask 1043456  }
  0x12   :  { %v994_v14 = vpack.i.bf16 %v44_v10, %v43_v9  ;;  %v107_v16 = vld [vmem:[%s1646_s0 + $0x1f] sm:$0xff]  ;;  %v181_v17 = vld [vmem:[%s1647_s1 + $0x68] sm:$0xff]  ;;  %219 = vmatprep.subr.mxu0 %v1064_v0  ;;  %v178_v24 = vld [vmem:[%s1647_s1 + $0x50] sm:$0xff]  ;;  %306 = vst.msk [vmem:[#allocation2 + $0x13] sm:$0x7] %vm304_vm3, %v1064_v0 }
  0x13   :  { %v180_v18 = vld [vmem:[%s1647_s1 + $0x60] sm:$0xff]  ;;  %v999_v19 = vpack.i.bf16 %v107_v16, %v106_v15  ;;  %220 = vmatpush1.msra.mxu0 %v181_v17  ;;  %v50_v23 = vld [vmem:[%s1646_s0 + $0xe] sm:$0xff]  ;;  %v175_v30 = vld [vmem:[%s1647_s1 + $0x38] sm:$0xff]  ;;  %309 = vst.msk [vmem:[#allocation2 + $0x16] sm:$0x7] %vm304_vm3, %v1064_v0 }
  0x14   :  { %85 = vrot.lane.b32.xlu1 %v49_v7, %s1065_s11  ;;  %v109_v21 = vld [vmem:[%s1646_s0 + $0x20] sm:$0xff]  ;;  %221 = vmatprep.subr.mxu0 %v1064_v0  ;;  %v177_v26 = vld [vmem:[%s1647_s1 + $0x48] sm:$0xff]  ;;  %v174_v32 = vld [vmem:[%s1647_s1 + $0x30] sm:$0xff] }
  0x15   :  { %77 = vrot.lane.b32.xlu0 %v47_v8, %s1066_s12  ;;  %222 = vmatpush1.msra.mxu0 %v180_v18  ;;  %v1004_v25 = vpack.i.bf16 %v109_v21, %v108_v20  ;;  %v114_v27 = vld [vmem:[%s1646_s0 + $0x1b] sm:$0xff]  ;;  %v117_v33 = vld [vmem:[%s1646_s0 + $0x24] sm:$0xff]  ;;  %v170_v39 = vld [vmem:[%s1647_s1 + $0x10] sm:$0xff] }
  0x16   :  { %223 = vmatprep.subr.mxu0 %v1064_v0  ;;  %v176_v28 = vld [vmem:[%s1647_s1 + $0x40] sm:$0xff]  ;;  %v173_v34 = vld [vmem:[%s1647_s1 + $0x28] sm:$0xff]  ;;  %v171_v37 = vld [vmem:[%s1647_s1 + $0x18] sm:$0xff] }
  0x17   :  { %224 = vmatpush1.msra.mxu0 %v179_v22  ;;  %v110_v29 = vld [vmem:[%s1646_s0 + $0x19] sm:$0xff]  ;;  %v115_v35 = vld [vmem:[%s1646_s0 + $0x23] sm:$0xff]  ;;  %v194_v43 = vld [vmem:[%s1647_s1 + $0xd0] sm:$0xff] }
  0x18   :  { %79 = vrot.lane.b32.xlu1 %v48_v12, %s1066_s12  ;;  %225 = vmatprep.subr.mxu0 %v1064_v0  ;;  %v116_v31 = vld [vmem:[%s1646_s0 + $0x1c] sm:$0xff]  ;;  %v169_v40 = vld [vmem:[%s1647_s1 + $0x8] sm:$0xff]  ;;  %v190_v47 = vld [vmem:[%s1647_s1 + $0xb0] sm:$0xff] }
  0x19   :  { %995 = vrot.lane.b32.xlu0 %v994_v14, %s1067_s5  ;;  %226 = vmatpush1.msra.mxu0 %v178_v24  ;;  %v172_v36 = vld [vmem:[%s1647_s1 + $0x20] sm:$0xff]  ;;  %v195_v42 = vld [vmem:[%s1647_s1 + $0xd8] sm:$0xff]  ;;  %v193_v44 = vld [vmem:[%s1647_s1 + $0xc8] sm:$0xff] }
  0x1a   :  { %227 = vmatprep.subr.mxu0 %v1064_v0  ;;  %v111_v38 = vld [vmem:[%s1646_s0 + $0x21] sm:$0xff]  ;;  %v191_v46 = vld [vmem:[%s1647_s1 + $0xb8] sm:$0xff]  ;;  %v186_v51 = vld [vmem:[%s1647_s1 + $0x90] sm:$0xff] }
  0x1b   :  { %228 = vmatpush1.msra.mxu0 %v177_v26  ;;  %v168_v41 = vld [vmem:[%s1647_s1] sm:$0xff]  ;;  %v189_v48 = vld [vmem:[%s1647_s1 + $0xa8] sm:$0xff]  ;;  %v187_v50 = vld [vmem:[%s1647_s1 + $0x98] sm:$0xff] }
  0x1c   :  { %1000 = vrot.lane.b32.xlu1 %v999_v19, %s1066_s12  ;;  %229 = vmatprep.subr.mxu0 %v1064_v0  ;;  %v192_v45 = vld [vmem:[%s1647_s1 + $0xc0] sm:$0xff]  ;;  %v185_v52 = vld [vmem:[%s1647_s1 + $0x88] sm:$0xff]  ;;  %v104_v17 = vld [vmem:[%s1646_s0 + $0x16] sm:$0xff] }
  0x1d   :  { %87 = vrot.lane.b32.xlu0 %v50_v23, %s1065_s11  ;;  %230 = vmatpush1.msra.mxu0 %v176_v28  ;;  %v188_v49 = vld [vmem:[%s1647_s1 + $0xa0] sm:$0xff]  ;;  %v46_v2 = vld [vmem:[%s1646_s0 + $0xc] sm:$0xff] }
  0x1e   :  { %231 = vmatprep.subr.mxu0 %v1064_v0  ;;  %v184_v53 = vld [vmem:[%s1647_s1 + $0x80] sm:$0xff]  ;;  %v38_v6 = vld [vmem:[%s1646_s0 + $0x8] sm:$0xff] }
  0x1f   :  { %232 = vmatpush1.msra.mxu0 %v175_v30  ;;  %v45_v56 = vld [vmem:[%s1646_s0 + $0x4] sm:$0xff] }
  0x20   :  { %1005 = vrot.lane.b32.xlu1 %v1004_v25, %s1065_s11  ;;  %233 = vmatprep.subr.mxu0 %v1064_v0  ;;  %v37_v60 = vld [vmem:[%s1646_s0] sm:$0xff] }
  0x21   :  { %144 = vrot.lane.b32.xlu0 %v114_v27, %s1066_s12  ;;  %234 = vmatpush1.msra.mxu0 %v174_v32  ;;  %v112_v25 = vld [vmem:[%s1646_s0 + $0x1a] sm:$0xff] }
  0x22   :  { %235 = vmatprep.subr.mxu0 %v1064_v0 }
  0x23   :  { %236 = vmatpush1.msra.mxu0 %v173_v34  ;;  %v105_v34 = vld [vmem:[%s1646_s0 + $0x1e] sm:$0xff] }
  0x24   :  { %136 = vrot.lane.b32.xlu1 %v110_v29, %s1067_s5  ;;  %237 = vmatprep.subr.mxu0 %v1064_v0 }
  0x25   :  { %152 = vrot.lane.b32.xlu0 %v116_v31, %s1065_s11  ;;  %238 = vmatpush1.msra.mxu0 %v172_v36 }
  0x26   :  { %239 = vmatprep.subr.mxu0 %v1064_v0 }
  0x27   :  { %240 = vmatpush1.msra.mxu0 %v171_v37 }
  0x28   :  { %154 = vrot.lane.b32.xlu1 %v117_v33, %s1065_s11  ;;  %241 = vmatprep.subr.mxu0 %v1064_v0  ;;  %v113_v33 = vld [vmem:[%s1646_s0 + $0x22] sm:$0xff] }
  0x29   :  { %146 = vrot.lane.b32.xlu0 %v115_v35, %s1066_s12  ;;  %242 = vmatpush1.msra.mxu0 %v170_v39 }
  0x2a   :  { %243 = vmatprep.subr.mxu0 %v1064_v0 }
  0x2b   :  { %244 = vmatpush1.msra.mxu0 %v169_v40 }
  0x2c   :  { %245 = vmatprep.subr.mxu0 %v1064_v0 }
  0x2d   :  { %138 = vrot.lane.b32.xlu0 %v111_v38, %s1067_s5  ;;  %246 = vmatpush1.msra.mxu0 %v168_v41 }
  0x2e   :  { %255 = vmatprep.subr.mxu0 %v1064_v0 }
  0x2f   :  { %256 = vmatpush2.msra.mxu0 %v195_v42 }
  0x30   :  { %257 = vmatprep.subr.mxu0 %v1064_v0 }
  0x31   :  { %258 = vmatpush2.msra.mxu0 %v194_v43 }
  0x32   :  { %259 = vmatprep.subr.mxu0 %v1064_v0 }
  0x33   :  { %260 = vmatpush2.msra.mxu0 %v193_v44  ;;  %v480_v44 = vld [vmem:[%s1649_s3 + $0x238] sm:$0xff] }
  0x34   :  { %261 = vmatprep.subr.mxu0 %v1064_v0 }
  0x35   :  { %262 = vmatpush2.msra.mxu0 %v192_v45  ;;  %v479_v45 = vld [vmem:[%s1649_s3 + $0x230] sm:$0xff] }
  0x36   :  { %263 = vmatprep.subr.mxu0 %v1064_v0 }
  0x37   :  { %264 = vmatpush2.msra.mxu0 %v191_v46  ;;  %v478_v46 = vld [vmem:[%s1649_s3 + $0x228] sm:$0xff] }
  0x38   :  { %265 = vmatprep.subr.mxu0 %v1064_v0 }
  0x39   :  { %266 = vmatpush2.msra.mxu0 %v190_v47  ;;  %v477_v47 = vld [vmem:[%s1649_s3 + $0x220] sm:$0xff] }
  0x3a   :  { %267 = vmatprep.subr.mxu0 %v1064_v0 }
  0x3b   :  { %268 = vmatpush2.msra.mxu0 %v189_v48  ;;  %v476_v48 = vld [vmem:[%s1649_s3 + $0x218] sm:$0xff] }
  0x3c   :  { %269 = vmatprep.subr.mxu0 %v1064_v0 }
  0x3d   :  { %270 = vmatpush2.msra.mxu0 %v188_v49  ;;  %v475_v49 = vld [vmem:[%s1649_s3 + $0x210] sm:$0xff] }
  0x3e   :  { %271 = vmatprep.subr.mxu0 %v1064_v0 }
  0x3f   :  { %272 = vmatpush2.msra.mxu0 %v187_v50  ;;  %v474_v50 = vld [vmem:[%s1649_s3 + $0x208] sm:$0xff] }
  0x40   :  { %273 = vmatprep.subr.mxu0 %v1064_v0 }
  0x41   :  { %274 = vmatpush2.msra.mxu0 %v186_v51  ;;  %v473_v51 = vld [vmem:[%s1649_s3 + $0x200] sm:$0xff] }
  0x42   :  { %275 = vmatprep.subr.mxu0 %v1064_v0 }
  0x43   :  { %276 = vmatpush2.msra.mxu0 %v185_v52  ;;  %v440_v52 = vld [vmem:[%s1649_s3 + $0xf8] sm:$0xff] }
  0x44   :  { %277 = vmatprep.subr.mxu0 %v1064_v0  ;;  %878 = vmatprep.subr.mxu1 %v440_v52 }
  0x45   :  { %278 = vmatpush2.msra.mxu0 %v184_v53  ;;  %v424_v53 = vld [vmem:[%s1649_s3 + $0x78] sm:$0xff] }
  0x46   :  { %957 = vmatprep.subr.mxu0 %v1064_v0  ;;  %879 = vmatpush3.msra.mxu1 %v424_v53 }
  0x82   :  { %v991_v54 = vpop.permute.xlu1 %990 }
  0x83   :  { %v986_v55 = vpop.permute.xlu0 %985  ;;  %v992_v62 = vunpack.i.l.bf16 %v991_v54  ;;  %v993_v8 = vunpack.i.h.bf16 %v991_v54  ;;  %v439_v54 = vld [vmem:[%s1649_s3 + $0xf0] sm:$0xff] }
  0x84   :  { %v987_v57 = vunpack.i.l.bf16 %v986_v55  ;;  %v988_v1 = vunpack.i.h.bf16 %v986_v55  ;;  %v423_v55 = vld [vmem:[%s1649_s3 + $0x70] sm:$0xff]  ;;  %880 = vmatprep.subr.mxu1 %v439_v54 }
  0x85   :  { %881 = vmatpush3.msra.mxu1 %v423_v55 }
  0x86   :  { %v86_v58 = vpop.permute.xlu1 %85  ;;  %v92_v4 = vsel %vm91_vm0, %v37_v60, %v987_v57  ;;  %v93_v14 = vsel %vm91_vm0, %v38_v6, %v988_v1  ;;  %v422_v57 = vld [vmem:[%s1649_s3 + $0x68] sm:$0xff]  ;;  %v436_v60 = vld [vmem:[%s1649_s3 + $0xd8] sm:$0xff]  ;;  %v863_v1 = vld [vmem:[%s1648_s2] ss:$0 sm:$0xff] }
  0x87   :  { %v78_v59 = vpop.permute.xlu0 %77  ;;  %v95_v10 = vsel %vm94_vm2, %v92_v4, %v992_v62  ;;  %v96_v19 = vsel %vm94_vm2, %v93_v14, %v993_v8  ;;  %v435_v62 = vld [vmem:[%s1649_s3 + $0xd0] sm:$0xff]  ;;  %v432_v14 = vld [vmem:[%s1649_s3 + $0xb8] sm:$0xff] }
  0x88   :  { %v100_v61 = vsel %vm91_vm0, %v45_v56, %v78_v59  ;;  %v438_v56 = vld [vmem:[%s1649_s3 + $0xe8] sm:$0xff]  ;;  %v421_v59 = vld [vmem:[%s1649_s3 + $0x60] sm:$0xff] }
  0x89   :  { %v102_v63 = vsel %vm94_vm2, %v100_v61, %v86_v58  ;;  %v437_v58 = vld [vmem:[%s1649_s3 + $0xe0] sm:$0xff]  ;;  %882 = vmatprep.subr.mxu1 %v438_v56  ;;  %v420_v61 = vld [vmem:[%s1649_s3 + $0x58] sm:$0xff] }
  0x8a   :  { %864 = vmatprep.mubr.msk.f32.mxu0 %vm97_vm1, %v102_v63  ;;  %v80_v3 = vpop.permute.xlu1 %79  ;;  %883 = vmatpush3.msra.mxu1 %v422_v57  ;;  %v419_v63 = vld [vmem:[%s1649_s3 + $0x50] sm:$0xff] }
  0x8b   :  { %v996_v5 = vpop.permute.xlu0 %995  ;;  %v101_v9 = vsel %vm91_vm0, %v46_v2, %v80_v3  ;;  %884 = vmatprep.subr.mxu1 %v437_v58  ;;  %v871_v58 = vld [vmem:[%s1646_s0 + $0x4] ss:$4 sm:$0xf] }
  0x8c   :  { %v997_v7 = vunpack.i.l.bf16 %v996_v5  ;;  %v998_v11 = vunpack.i.h.bf16 %v996_v5  ;;  %885 = vmatpush3.msra.mxu1 %v421_v59  ;;  %v875_v59 = vld [vmem:[%s1646_s0 + $0x1a] ss:$4 sm:$0xf] }
  0x8d   :  { %886 = vmatprep.subr.mxu1 %v436_v60 }
  0x8e   :  { %v1001_v12 = vpop.permute.xlu1 %1000  ;;  %v98_v13 = vsel %vm97_vm1, %v95_v10, %v997_v7  ;;  %v99_v21 = vsel %vm97_vm1, %v96_v19, %v998_v11  ;;  %887 = vmatpush3.msra.mxu1 %v420_v61  ;;  %v418_v10 = vld [vmem:[%s1649_s3 + $0x48] sm:$0xff]  ;;  %v433_v11 = vld [vmem:[%s1649_s3 + $0xc0] sm:$0xff]  ;;  %v1029_v61 = vpack.i.bf16 %v871_v58, %v875_v59 }
  0x8f   :  { %v1002_v15 = vunpack.i.l.bf16 %v1001_v12  ;;  %v88_v16 = vpop.permute.xlu0 %87  ;;  %280 = vmatmul.mubr.f32.vlgmr.msra.gmra.mxu0 %v98_v13  ;;  %v1003_v31 = vunpack.i.h.bf16 %v1001_v12  ;;  %888 = vmatprep.subr.mxu1 %v435_v62  ;;  %v417_v13 = vld [vmem:[%s1649_s3 + $0x40] sm:$0xff]  ;;  %v458_v58 = vld [vmem:[%s1649_s3 + $0x188] sm:$0xff] }
  0x90   :  { %v103_v18 = vsel %vm94_vm2, %v101_v9, %v88_v16  ;;  %958 = vmatpush3.msra.mxu0 %v480_v44  ;;  %889 = vmatpush3.msra.mxu1 %v419_v63  ;;  %v434_v9 = vld [vmem:[%s1649_s3 + $0xc8] sm:$0xff]  ;;  %v431_v16 = vld [vmem:[%s1649_s3 + $0xb0] sm:$0xff] }
  0x91   :  { %865 = vmatprep.mubr.msk.f32.mxu0 %vm97_vm1, %v103_v18  ;;  %v158_v22 = vsel %vm91_vm0, %v104_v17, %v1002_v15  ;;  %v159_v39 = vsel %vm91_vm0, %v105_v34, %v1003_v31  ;;  %959 = vmatprep.subr.mxu0 %v1064_v0  ;;  %v416_v15 = vld [vmem:[%s1649_s3 + $0x38] sm:$0xff]  ;;  %v415_v18 = vld [vmem:[%s1649_s3 + $0x30] sm:$0xff]  ;;  %v410_v44 = vld [vmem:[%s1649_s3 + $0x8] sm:$0xff] }
  0x92   :  { %v1006_v20 = vpop.permute.xlu1 %1005  ;;  %960 = vmatpush3.msra.mxu0 %v479_v45  ;;  %890 = vmatprep.subr.mxu1 %v434_v9  ;;  %v425_v45 = vld [vmem:[%s1649_s3 + $0x80] sm:$0xff] }
  0x93   :  { %v1007_v23 = vunpack.i.l.bf16 %v1006_v20  ;;  %v145_v24 = vpop.permute.xlu0 %144  ;;  %285 = vmatmul.mubr.f32.gmra.mxu0 %v99_v21  ;;  %v1008_v36 = vunpack.i.h.bf16 %v1006_v20  ;;  %961 = vmatprep.subr.mxu0 %v1064_v0  ;;  %v430_v20 = vld [vmem:[%s1649_s3 + $0xa8] sm:$0xff] }
  0x94   :  { %v164_v28 = vsel %vm91_vm0, %v112_v25, %v145_v24  ;;  %962 = vmatpush3.msra.mxu0 %v478_v46  ;;  %891 = vmatpush3.msra.mxu1 %v418_v10  ;;  %v429_v24 = vld [vmem:[%s1649_s3 + $0xa0] sm:$0xff] }
  0x95   :  { %v160_v26 = vsel %vm94_vm2, %v158_v22, %v1007_v23  ;;  %v161_v42 = vsel %vm94_vm2, %v159_v39, %v1008_v36  ;;  %963 = vmatprep.subr.mxu0 %v1064_v0  ;;  %892 = vmatprep.subr.mxu1 %v433_v11  ;;  %v414_v22 = vld [vmem:[%s1649_s3 + $0x28] sm:$0xff]  ;;  %v413_v25 = vld [vmem:[%s1649_s3 + $0x20] sm:$0xff] }
  0x96   :  { %v137_v27 = vpop.permute.xlu1 %136  ;;  %964 = vmatpush3.msra.mxu0 %v477_v47  ;;  %893 = vmatpush3.msra.mxu1 %v417_v13  ;;  %v872_v36 = vld [vmem:[%s1646_s0 + $0x5] ss:$4 sm:$0xf]  ;;  %v472_v47 = vld [vmem:[%s1649_s3 + $0x1f8] sm:$0xff] }
  0x97   :  { %v153_v29 = vpop.permute.xlu0 %152  ;;  %v162_v30 = vsel %vm97_vm1, %v160_v26, %v137_v27  ;;  %965 = vmatprep.subr.mxu0 %v1064_v0  ;;  %894 = vmatprep.subr.mxu1 %v432_v14  ;;  %v428_v26 = vld [vmem:[%s1649_s3 + $0x98] sm:$0xff]  ;;  %v409_v46 = vld [vmem:[%s1649_s3] sm:$0xff] }
  0x98   :  { %v166_v32 = vsel %vm94_vm2, %v164_v28, %v153_v29  ;;  %966 = vmatpush3.msra.mxu0 %v476_v48  ;;  %895 = vmatpush3.msra.mxu1 %v416_v15  ;;  %v873_v48 = vld [vmem:[%s1646_s0 + $0x6] ss:$4 sm:$0xf]  ;;  %v877_v62 = vld [vmem:[%s1646_s0 + $0x1c] ss:$4 sm:$0xf] }
  0x99   :  { %866 = vmatprep.mubr.msk.f32.mxu0 %vm97_vm1, %v166_v32  ;;  %967 = vmatprep.subr.mxu0 %v1064_v0 }
  0x9a   :  { %290 = vmatmul.mubr.f32.gmra.mxu0 %v162_v30  ;;  %v155_v35 = vpop.permute.xlu1 %154  ;;  %896 = vmatprep.subr.mxu1 %v431_v16  ;;  %v412_v30 = vld [vmem:[%s1649_s3 + $0x18] sm:$0xff] }
  0x9b   :  { %v147_v37 = vpop.permute.xlu0 %146  ;;  %968 = vmatpush3.msra.mxu0 %v475_v49  ;;  %897 = vmatpush3.msra.mxu1 %v415_v18 }
  0x9c   :  { %v165_v38 = vsel %vm91_vm0, %v113_v33, %v147_v37  ;;  %969 = vmatprep.subr.mxu0 %v1064_v0  ;;  %898 = vmatprep.subr.mxu1 %v430_v20  ;;  %v876_v37 = vld [vmem:[%s1646_s0 + $0x1b] ss:$4 sm:$0xf] }
  0x9d   :  { %v167_v40 = vsel %vm94_vm2, %v165_v38, %v155_v35  ;;  %970 = vmatpush3.msra.mxu0 %v474_v50  ;;  %899 = vmatpush3.msra.mxu1 %v414_v22 }
  0x9e   :  { %867 = vmatprep.mubr.msk.f32.mxu0 %vm97_vm1, %v167_v40  ;;  %971 = vmatprep.subr.mxu0 %v1064_v0  ;;  %v427_v40 = vld [vmem:[%s1649_s3 + $0x90] sm:$0xff] }
  0x9f   :  { %v139_v41 = vpop.permute.xlu0 %138  ;;  %972 = vmatpush3.msra.mxu0 %v473_v51  ;;  %900 = vmatprep.subr.mxu1 %v429_v24 }
  0xa0   :  { %v163_v43 = vsel %vm97_vm1, %v161_v42, %v139_v41  ;;  %901 = vmatpush3.msra.mxu1 %v413_v25  ;;  %v411_v41 = vld [vmem:[%s1649_s3 + $0x10] sm:$0xff]  ;;  %v426_v42 = vld [vmem:[%s1649_s3 + $0x88] sm:$0xff] }
  0xa1   :  { %295 = vmatmul.mubr.f32.gmra.mxu0 %v163_v43  ;;  %902 = vmatprep.subr.mxu1 %v428_v26  ;;  %v1034_v43 = vpack.i.bf16 %v872_v36, %v876_v37  ;;  %v471_v25 = vld [vmem:[%s1649_s3 + $0x1f0] sm:$0xff]  ;;  %v452_v36 = vld [vmem:[%s1649_s3 + $0x158] sm:$0xff] }
  0xa2   :  { %973 = vmatprep.mubr.msk.f32.mxu0 %vm1068_vm4, %v1064_v0  ;;  %903 = vmatpush3.msra.mxu1 %v412_v30  ;;  %v455_v26 = vld [vmem:[%s1649_s3 + $0x170] sm:$0xff] }
  0xa3   :  { %904 = vmatprep.subr.mxu1 %v427_v40  ;;  %v467_v37 = vld [vmem:[%s1649_s3 + $0x1d0] sm:$0xff]  ;;  %v450_v40 = vld [vmem:[%s1649_s3 + $0x148] sm:$0xff] }
  0xa4   :  { %905 = vmatpush3.msra.mxu1 %v411_v41  ;;  %v465_v41 = vld [vmem:[%s1649_s3 + $0x1c0] sm:$0xff] }
  0xa5   :  { %906 = vmatprep.subr.mxu1 %v426_v42  ;;  %v449_v42 = vld [vmem:[%s1649_s3 + $0x140] sm:$0xff] }
  0xa6   :  { %907 = vmatpush3.msra.mxu1 %v410_v44  ;;  %v448_v44 = vld [vmem:[%s1649_s3 + $0x138] sm:$0xff] }
  0xa7   :  { %908 = vmatprep.subr.mxu1 %v425_v45  ;;  %v463_v45 = vld [vmem:[%s1649_s3 + $0x1b0] sm:$0xff] }
  0xa8   :  { %909 = vmatpush3.msra.mxu1 %v409_v46  ;;  %v447_v46 = vld [vmem:[%s1649_s3 + $0x130] sm:$0xff] }
  0xa9   :  { %913 = vmatprep.subr.mxu1 %v472_v47  ;;  %v462_v47 = vld [vmem:[%s1649_s3 + $0x1a8] sm:$0xff] }
 0x14f   :  { %v281_v2 = vpop.f32.mrf.mxu0 }
 0x150   :  { %v282_v3 = vadd.f32 %v863_v1, %v281_v2 }
 0x151   :  { %v283_v4 = vpop.f32.mrf.mxu0 }
 0x152   :  { %v300_v5 = vmax.f32 %v282_v3, 0.0 }
 0x153   :  { %v286_v6 = vpop.f32.mrf.mxu0 }
 0x154   :  { %307 = vst.msk [vmem:[#allocation2 + $0x3] sm:$0xff] %vm94_vm2, %v300_v5  ;;  %v287_v7 = vadd.f32 %v863_v1, %v286_v6 }
 0x155   :  { %v288_v8 = vpop.f32.mrf.mxu0 }
 0x156   :  { %v301_v12 = vmax.f32 %v287_v7, 0.0 }
 0x158   :  { %308 = vst.msk [vmem:[#allocation2 + $0xb] sm:$0xff] %vm94_vm2, %v301_v12 }
 0x15a   :  { %v291_v17 = vpop.f32.mrf.mxu0 }
 0x15b   :  { %v292_v19 = vadd.f32 %v863_v1, %v291_v17 }
 0x15c   :  { %v293_v21 = vpop.f32.mrf.mxu0 }
 0x15d   :  { %v302_v23 = vmax.f32 %v292_v19, 0.0 }
 0x15f   :  { %311 = vst.msk [vmem:[#allocation2 + $0x19] sm:$0xff] %vm94_vm2, %v302_v23  ;;  %v315_v27 = vld [vmem:[#allocation2 + $0x1] ss:$4 sm:$0xf]  ;;  %v456_v23 = vld [vmem:[%s1649_s3 + $0x178] sm:$0xff] }
 0x160   :  { %v319_v28 = vld [vmem:[#allocation2 + $0x3] ss:$4 sm:$0xf]  ;;  %v323_v32 = vld [vmem:[#allocation2 + $0x5] ss:$4 sm:$0xf] }
 0x161   :  { %v1014_v29 = vpack.i.bf16 %v315_v27, %v319_v28  ;;  %v296_v31 = vpop.f32.mrf.mxu0  ;;  %v327_v33 = vld [vmem:[#allocation2 + $0x7] ss:$4 sm:$0xf]  ;;  %v329_v56 = vld [vmem:[#allocation2 + $0x8] ss:$4 sm:$0xf] }
 0x162   :  { %v297_v34 = vadd.f32 %v863_v1, %v296_v31  ;;  %v1024_v39 = vpack.i.bf16 %v323_v32, %v327_v33  ;;  %v317_v10 = vld [vmem:[#allocation2 + $0x2] ss:$4 sm:$0xf]  ;;  %v313_v14 = vld [vmem:[#allocation2] ss:$4 sm:$0xf] }
 0x163   :  { %1015 = vrot.lane.b32.xlu0 %v1014_v29, %s1065_s11  ;;  %v298_v35 = vpop.f32.mrf.mxu0  ;;  %v325_v27 = vld [vmem:[#allocation2 + $0x6] ss:$4 sm:$0xf] }
 0x164   :  { %v303_v38 = vmax.f32 %v297_v34, 0.0  ;;  %v470_v29 = vld [vmem:[%s1649_s3 + $0x1e8] sm:$0xff]  ;;  %v469_v33 = vld [vmem:[%s1649_s3 + $0x1e0] sm:$0xff]  ;;  %v468_v35 = vld [vmem:[%s1649_s3 + $0x1d8] sm:$0xff] }
 0x165   :  { %v454_v32 = vld [vmem:[%s1649_s3 + $0x168] sm:$0xff]  ;;  %v453_v34 = vld [vmem:[%s1649_s3 + $0x160] sm:$0xff] }
 0x166   :  { %312 = vst.msk [vmem:[#allocation2 + $0x21] sm:$0xff] %vm94_vm2, %v303_v38  ;;  %v451_v38 = vld [vmem:[%s1649_s3 + $0x150] sm:$0xff] }
 0x167   :  { %1025 = vrot.lane.b32.xlu0 %v1024_v39, %s1065_s11  ;;  %v466_v39 = vld [vmem:[%s1649_s3 + $0x1c8] sm:$0xff] }
 0x16b   :  { %1035 = vrot.lane.b32.xlu0 %v1034_v43, %s1065_s11  ;;  %v464_v43 = vld [vmem:[%s1649_s3 + $0x1b8] sm:$0xff] }
 0x16d   :  { %v353_v49 = vld [vmem:[#allocation2 + $0x17] ss:$4 sm:$0xf]  ;;  %v357_v50 = vld [vmem:[#allocation2 + $0x19] ss:$4 sm:$0xf] }
 0x16e   :  { %v1009_v51 = vpack.i.bf16 %v353_v49, %v357_v50  ;;  %v367_v52 = vld [vmem:[#allocation2 + $0x1e] ss:$4 sm:$0xf]  ;;  %v361_v53 = vld [vmem:[#allocation2 + $0x1b] ss:$4 sm:$0xf] }
 0x16f   :  { %718 = vrot.lane.b32.xlu0 %v873_v48, %s1067_s5  ;;  %v397_v54 = vrot.slane %v367_v52, 4  ;;  %v365_v55 = vld [vmem:[#allocation2 + $0x1d] ss:$4 sm:$0xf] }
 0x170   :  { %1010 = vrot.lane.b32.xlu1 %v1009_v51, %s1065_s11  ;;  %v1019_v60 = vpack.i.bf16 %v361_v53, %v365_v55  ;;  %v351_v7 = vld [vmem:[#allocation2 + $0x16] ss:$4 sm:$0xf]  ;;  %v355_v8 = vld [vmem:[#allocation2 + $0x18] ss:$4 sm:$0xf] }
 0x171   :  { %v408_v57 = vsel %vm403_vm5, %v329_v56, %v397_v54  ;;  %v363_v20 = vld [vmem:[#allocation2 + $0x1c] ss:$4 sm:$0xf]  ;;  %v359_v54 = vld [vmem:[#allocation2 + $0x1a] ss:$4 sm:$0xf] }
 0x172   :  { %974 = vmatmul.mubr.msk.f32.vlgmr.msra.gmra.mxu0 %vm94_vm2, %v408_v57  ;;  %v446_v48 = vld [vmem:[%s1649_s3 + $0x128] sm:$0xff]  ;;  %v461_v49 = vld [vmem:[%s1649_s3 + $0x1a0] sm:$0xff]  ;;  %v460_v52 = vld [vmem:[%s1649_s3 + $0x198] sm:$0xff] }
 0x173   :  { %v445_v51 = vld [vmem:[%s1649_s3 + $0x120] sm:$0xff]  ;;  %v444_v53 = vld [vmem:[%s1649_s3 + $0x118] sm:$0xff]  ;;  %v459_v55 = vld [vmem:[%s1649_s3 + $0x190] sm:$0xff] }
 0x174   :  { %1020 = vrot.lane.b32.xlu1 %v1019_v60, %s1065_s11  ;;  %v443_v57 = vld [vmem:[%s1649_s3 + $0x110] sm:$0xff]  ;;  %v442_v60 = vld [vmem:[%s1649_s3 + $0x108] sm:$0xff] }
 0x178   :  { %1030 = vrot.lane.b32.xlu1 %v1029_v61, %s1066_s12 }
 0x17c   :  { %741 = vrot.lane.b32.xlu1 %v877_v62, %s1067_s5  ;;  %v457_v62 = vld [vmem:[%s1649_s3 + $0x180] sm:$0xff] }
 0x1d5   :  { %v1016_v63 = vpop.permute.xlu0 %1015 }
 0x1d6   :  { %v1018_v2 = vunpack.i.h.bf16 %v1016_v63  ;;  %v1017_v3 = vunpack.i.l.bf16 %v1016_v63  ;;  %v441_v63 = vld [vmem:[%s1649_s3 + $0x100] sm:$0xff] }
 0x1d8   :  { %v347_v18 = vsel %vm94_vm2, %v317_v10, %v1017_v3  ;;  %v346_v19 = vsel %vm94_vm2, %v313_v14, %v1018_v2  ;;  %v782_v2 = vld [vmem:[#allocation3 + $0xf8] sm:$0xff]  ;;  %v776_v10 = vld [vmem:[#allocation3 + $0xc8] sm:$0xff] }
 0x1d9   :  { %v1513_v6 = vpop.permute.xlu0 %1025  ;;  %v772_v14 = vld [vmem:[#allocation3 + $0xa8] sm:$0xff] }
 0x1da   :  { %v1027_v16 = vunpack.i.l.bf16 %v1513_v6  ;;  %v1028_v59 = vunpack.i.h.bf16 %v1513_v6  ;;  %v780_v6 = vld [vmem:[#allocation3 + $0xe8] sm:$0xff] }
 0x1dc   :  { %v349_v30 = vsel %vm94_vm2, %v325_v27, %v1027_v16  ;;  %v770_v16 = vld [vmem:[#allocation3 + $0x98] sm:$0xff] }
 0x1dd   :  { %v762_v27 = vld [vmem:[#allocation3 + $0x58] sm:$0xff] }
 0x1e2   :  { %v1011_v1 = vpop.permute.xlu1 %1010 }
 0x1e3   :  { %v1013_v4 = vunpack.i.h.bf16 %v1011_v1  ;;  %v1012_v5 = vunpack.i.l.bf16 %v1011_v1  ;;  %v321_v1 = vld [vmem:[#allocation2 + $0x4] ss:$4 sm:$0xf] }
 0x1e4   :  { %v348_v3 = vsel %vm94_vm2, %v321_v1, %v1028_v59 }
 0x1e5   :  { %v384_v9 = vsel %vm94_vm2, %v351_v7, %v1013_v4  ;;  %v385_v11 = vsel %vm94_vm2, %v355_v8, %v1012_v5  ;;  %v781_v4 = vld [vmem:[#allocation3 + $0xf0] sm:$0xff]  ;;  %v779_v7 = vld [vmem:[#allocation3 + $0xe0] sm:$0xff]  ;;  %v778_v8 = vld [vmem:[#allocation3 + $0xd8] sm:$0xff] }
 0x1e6   :  { %v1517_v12 = vpop.permute.xlu1 %1020  ;;  %v394_v13 = vrot.slane %v385_v11, 4  ;;  %v393_v15 = vrot.slane %v384_v9, 4  ;;  %v777_v9 = vld [vmem:[#allocation3 + $0xd0] sm:$0xff]  ;;  %v775_v11 = vld [vmem:[#allocation3 + $0xc0] sm:$0xff] }
 0x1e7   :  { %v1022_v17 = vunpack.i.l.bf16 %v1517_v12  ;;  %v1023_v50 = vunpack.i.h.bf16 %v1517_v12  ;;  %v774_v12 = vld [vmem:[#allocation3 + $0xb8] sm:$0xff] }
 0x1e8   :  { %v405_v21 = vsel %vm403_vm5, %v347_v18, %v394_v13  ;;  %v404_v22 = vsel %vm403_vm5, %v346_v19, %v393_v15  ;;  %v773_v13 = vld [vmem:[#allocation3 + $0xb0] sm:$0xff]  ;;  %v771_v15 = vld [vmem:[#allocation3 + $0xa0] sm:$0xff] }
 0x1e9   :  { %v387_v24 = vsel %vm94_vm2, %v363_v20, %v1022_v17  ;;  %555 = vmatprep.mubr.f32.mxu1 %v405_v21  ;;  %v386_v56 = vsel %vm94_vm2, %v359_v54, %v1023_v50  ;;  %v769_v17 = vld [vmem:[#allocation3 + $0x90] sm:$0xff]  ;;  %v767_v19 = vld [vmem:[#allocation3 + $0x80] sm:$0xff]  ;;  %v766_v20 = vld [vmem:[#allocation3 + $0x78] sm:$0xff] }
 0x1ea   :  { %556 = vmatmul.mubr.f32.vlgmr.msra.gmra.mxu1 %v404_v22  ;;  %v396_v28 = vrot.slane %v387_v24, 4  ;;  %v395_v61 = vrot.slane %v386_v56, 4  ;;  %v1031_v18 = vpop.permute.xlu1 %1030  ;;  %v765_v21 = vld [vmem:[#allocation3 + $0x70] sm:$0xff]  ;;  %v764_v24 = vld [vmem:[#allocation3 + $0x68] sm:$0xff] }
 0x1eb   :  { %914 = vmatpush3.msra.mxu1 %v456_v23  ;;  %v1032_v22 = vunpack.i.l.bf16 %v1031_v18  ;;  %v1036_v23 = vpop.permute.xlu0 %1035 }
 0x1ec   :  { %915 = vmatprep.subr.mxu1 %v471_v25  ;;  %v407_v31 = vsel %vm403_vm5, %v349_v30, %v396_v28  ;;  %v406_v5 = vsel %vm403_vm5, %v348_v3, %v395_v61  ;;  %v874_v25 = vld [vmem:[%s1646_s0 + $0x19] ss:$4 sm:$0xf]  ;;  %v1037_v28 = vunpack.i.l.bf16 %v1036_v23 }
 0x1ed   :  { %916 = vmatpush3.msra.mxu1 %v455_v26  ;;  %625 = vmatprep.mubr.f32.mxu1 %v407_v31  ;;  %v763_v26 = vld [vmem:[#allocation3 + $0x60] sm:$0xff]  ;;  %v761_v30 = vld [vmem:[#allocation3 + $0x50] sm:$0xff]  ;;  %v744_v31 = vsel %vm91_vm0, %v874_v25, %v1032_v22 }
 0x1ee   :  { %917 = vmatprep.subr.mxu1 %v470_v29  ;;  %v1033_v29 = vunpack.i.h.bf16 %v1031_v18 }
 0x1ef   :  { %918 = vmatpush3.msra.mxu1 %v454_v32  ;;  %v760_v32 = vld [vmem:[#allocation3 + $0x48] sm:$0xff] }
 0x1f0   :  { %919 = vmatprep.subr.mxu1 %v469_v33  ;;  %v870_v33 = vld [vmem:[%s1646_s0 + $0x3] ss:$4 sm:$0xf] }
 0x1f1   :  { %920 = vmatpush3.msra.mxu1 %v453_v34  ;;  %v759_v34 = vld [vmem:[#allocation3 + $0x40] sm:$0xff] }
 0x1f2   :  { %921 = vmatprep.subr.mxu1 %v468_v35  ;;  %v1038_v35 = vunpack.i.h.bf16 %v1036_v23 }
 0x1f3   :  { %922 = vmatpush3.msra.mxu1 %v452_v36  ;;  %v758_v36 = vld [vmem:[#allocation3 + $0x38] sm:$0xff] }
 0x1f4   :  { %923 = vmatprep.subr.mxu1 %v467_v37  ;;  %v742_v37 = vpop.permute.xlu1 %741 }
 0x1f5   :  { %924 = vmatpush3.msra.mxu1 %v451_v38  ;;  %v745_v38 = vsel %vm94_vm2, %v744_v31, %v1037_v28 }
 0x1f6   :  { %925 = vmatprep.subr.mxu1 %v466_v39  ;;  %v757_v39 = vld [vmem:[#allocation3 + $0x30] sm:$0xff] }
 0x1f7   :  { %926 = vmatpush3.msra.mxu1 %v450_v40  ;;  %v721_v40 = vsel %vm91_vm0, %v870_v33, %v1033_v29 }
 0x1f8   :  { %927 = vmatprep.subr.mxu1 %v465_v41  ;;  %v756_v41 = vld [vmem:[#allocation3 + $0x28] sm:$0xff] }
 0x1f9   :  { %928 = vmatpush3.msra.mxu1 %v449_v42  ;;  %v746_v42 = vsel %vm97_vm1, %v745_v38, %v742_v37 }
 0x1fa   :  { %929 = vmatprep.subr.mxu1 %v464_v43  ;;  %v755_v43 = vld [vmem:[#allocation3 + $0x20] sm:$0xff] }
 0x1fb   :  { %930 = vmatpush3.msra.mxu1 %v448_v44  ;;  %v719_v44 = vpop.permute.xlu0 %718 }
 0x1fc   :  { %931 = vmatprep.subr.mxu1 %v463_v45  ;;  %v722_v45 = vsel %vm94_vm2, %v721_v40, %v1038_v35 }
 0x1fd   :  { %932 = vmatpush3.msra.mxu1 %v447_v46  ;;  %v754_v46 = vld [vmem:[#allocation3 + $0x18] sm:$0xff]  ;;  %v723_v50 = vsel %vm97_vm1, %v722_v45, %v719_v44 }
 0x1fe   :  { %933 = vmatprep.subr.mxu1 %v462_v47  ;;  %v753_v47 = vld [vmem:[#allocation3 + $0x10] sm:$0xff] }
 0x1ff   :  { %934 = vmatpush3.msra.mxu1 %v446_v48  ;;  %v748_v48 = vrot.slane %v746_v42, 4 }
 0x200   :  { %935 = vmatprep.subr.mxu1 %v461_v49  ;;  %v752_v49 = vld [vmem:[#allocation3 + $0x8] sm:$0xff] }
 0x201   :  { %936 = vmatpush3.msra.mxu1 %v445_v51  ;;  %v751_v51 = vld [vmem:[#allocation3] sm:$0xff] }
 0x202   :  { %937 = vmatprep.subr.mxu1 %v460_v52  ;;  %v750_v52 = vsel %vm403_vm5, %v723_v50, %v748_v48 }
 0x203   :  { %938 = vmatpush3.msra.mxu1 %v444_v53 }
 0x204   :  { %939 = vmatprep.subr.mxu1 %v459_v55 }
 0x205   :  { %940 = vmatpush3.msra.mxu1 %v443_v57 }
 0x206   :  { %941 = vmatprep.subr.mxu1 %v458_v58 }
 0x207   :  { %942 = vmatpush3.msra.mxu1 %v442_v60  ;;  %v868_v60 = vld [vmem:[%s1650_s4] ss:$0 sm:$0xff] }
 0x208   :  { %943 = vmatprep.subr.mxu1 %v457_v62 }
 0x209   :  { %944 = vmatpush3.msra.mxu1 %v441_v63 }
 0x20a   :  { %626 = vmatmul.mubr.f32.vlgmr.msra.gmra.mxu1 %v406_v5  ;;  %783 = vmatprep.subr.mxu1 %v782_v2 }
 0x20b   :  { %784 = vmatpush1.msra.mxu1 %v781_v4  ;;  %847 = vmatprep.mubr.f32.mxu1 %v1064_v0  ;;  %v768_v0 = vld [vmem:[#allocation3 + $0x88] sm:$0xff] }
 0x20c   :  { %785 = vmatprep.subr.mxu1 %v780_v6 }
 0x20d   :  { %786 = vmatpush1.msra.mxu1 %v779_v7 }
 0x20e   :  { %787 = vmatprep.subr.mxu1 %v778_v8 }
 0x20f   :  { %788 = vmatpush1.msra.mxu1 %v777_v9 }
 0x210   :  { %789 = vmatprep.subr.mxu1 %v776_v10 }
 0x211   :  { %790 = vmatpush1.msra.mxu1 %v775_v11 }
 0x212   :  { %791 = vmatprep.subr.mxu1 %v774_v12 }
 0x213   :  { %792 = vmatpush1.msra.mxu1 %v773_v13 }
 0x214   :  { %793 = vmatprep.subr.mxu1 %v772_v14 }
 0x215   :  { %794 = vmatpush1.msra.mxu1 %v771_v15 }
 0x216   :  { %795 = vmatprep.subr.mxu1 %v770_v16 }
 0x217   :  { %796 = vmatpush1.msra.mxu1 %v769_v17 }
 0x218   :  { %797 = vmatprep.subr.mxu1 %v768_v0 }
 0x219   :  { %798 = vmatpush1.msra.mxu1 %v767_v19 }
 0x21a   :  { %799 = vmatprep.subr.mxu1 %v766_v20 }
 0x21b   :  { %800 = vmatpush1.msra.mxu1 %v765_v21 }
 0x21c   :  { %801 = vmatprep.subr.mxu1 %v764_v24 }
 0x21d   :  { %802 = vmatpush1.msra.mxu1 %v763_v26 }
 0x21e   :  { %803 = vmatprep.subr.mxu1 %v762_v27 }
 0x21f   :  { %804 = vmatpush1.msra.mxu1 %v761_v30 }
 0x220   :  { %805 = vmatprep.subr.mxu1 %v760_v32 }
 0x221   :  { %806 = vmatpush1.msra.mxu1 %v759_v34 }
 0x222   :  { %807 = vmatprep.subr.mxu1 %v758_v36 }
 0x223   :  { %808 = vmatpush1.msra.mxu1 %v757_v39 }
 0x224   :  { %809 = vmatprep.subr.mxu1 %v756_v41 }
 0x225   :  { %810 = vmatpush1.msra.mxu1 %v755_v43 }
 0x226   :  { %811 = vmatprep.subr.mxu1 %v754_v46 }
 0x227   :  { %812 = vmatpush1.msra.mxu1 %v753_v47 }
 0x228   :  { %813 = vmatprep.subr.mxu1 %v752_v49 }
 0x229   :  { %814 = vmatpush1.msra.mxu1 %v751_v51 }
 0x22a   :  { %848 = vmatmul.mubr.f32.vlgmr.msra.gmra.mxu1 %v750_v52 }
 0x232   :  { %v697_v53 = vpop.f32.mrf.mxu0 }
 0x234   :  { %v975_v54 = vpop.f32.mrf.mxu0 }
 0x2aa   :  { %v910_v55 = vpop.f32.mrf.mxu1 }
 0x2ac   :  { %v911_v56 = vpop.f32.mrf.mxu1 }
 0x2ad   :  { %v912_v59 = vadd.f32 %v911_v56, %v910_v55 }
 0x2af   :  { %v558_v62 = vadd.f32 %v912_v59, %v868_v60 }
 0x2ca   :  { %v945_v57 = vpop.f32.mrf.mxu1 }
 0x2cc   :  { %v946_v58 = vpop.f32.mrf.mxu1 }
 0x2cd   :  { %v947_v61 = vadd.f32 %v946_v58, %v945_v57 }
 0x2cf   :  { %v628_v63 = vadd.f32 %v947_v61, %v558_v62 }
 0x2d1   :  { %v698_v3 = vadd.f32 %v697_v53, %v628_v63 }
 0x2ea   :  { %v849_v1 = vpop.f32.mrf.mxu1 }
 0x2ec   :  { %v851_v2 = vpop.f32.mrf.mxu1 }
 0x2ed   :  { %v854_v4 = vmax.f32 %v849_v1, %v851_v2 }
 0x2ef   :  { %v855_v5 = vadd.f32 %v854_v4, %v698_v3 }
 0x2f1   :  { %v856_v6 = vmax.f32 %v855_v5, 0.0 }
 0x2f3   :  { %857 = vst [vmem:[%s1652_s6] sm:$0xff] %v856_v6 }
 0x2f4   :  { %862 = vsyncpa [#allocation4], 1 }

</bundles_post_ra>
